<compile_context>
chip_gen: v5e
topology: v5e:2x2
jax: 0.10.0
libtpu: 0.0.40
codegen_flags: <defaults>
</compile_context>

<pallas_src>
import jax
import jax.numpy as jnp
from jax.experimental import pallas as pl
from jax.experimental.pallas import tpu as pltpu


# ----------------------------------------------------------------------------
# Hardware-aware sizing
# ----------------------------------------------------------------------------
def _vmem_budget():
    """Returns (tile_target_bytes, vmem_limit_bytes, tensorcores_per_chip)."""
    cap = None
    try:
        info = pltpu.get_tpu_info()
        cap = int(getattr(info, "vmem_capacity_bytes", 0) or 0) or None
    except Exception:
        cap = None
    if cap is None:
        cap = 64 * 1024 * 1024  # conservative: smallest per-core VMEM (v7x-class)
    if cap >= 96 * 1024 * 1024:
        # v5e / v6e: 128 MiB VMEM per core, 1 TensorCore per chip.
        return 8 * 1024 * 1024, 80 * 1024 * 1024, 1
    # v7x-class: 64 MiB VMEM per core, 2 TensorCores per chip.
    return 5 * 1024 * 1024, 44 * 1024 * 1024, 2


def _split_l(l, tb, c, target_bytes=1 << 20, max_chunks=32):
    """Static (start, size) chunks over L bounding the per-chunk f32 temp."""
    per_row_f32 = max(1, tb * c * 4)
    chunk = max(1, target_bytes // per_row_f32)
    chunk = max(chunk, pl.cdiv(l, max_chunks))      # bound unroll / trace size
    if chunk < l:
        chunk = max(8, (chunk // 8) * 8)            # sublane-aligned chunks
    chunk = min(chunk, l)
    out, s = [], 0
    while s < l:
        n = min(chunk, l - s)
        out.append((s, n))
        s += n
    return out


def _band_matrix(conv_weight, c, k_size):
    """(C, C) f32 band matrix B with B[j, i] = w[j - i + pad]; conv = y @ B."""
    pad = (k_size - 1) // 2
    w = conv_weight.astype(jnp.float32)
    j = jax.lax.broadcasted_iota(jnp.int32, (c, c), 0)
    i = jax.lax.broadcasted_iota(jnp.int32, (c, c), 1)
    d = j - i + pad
    band = jnp.zeros((c, c), jnp.float32)
    for t in range(k_size):
        band = jnp.where(d == t, w[t], band)
    return band


# ----------------------------------------------------------------------------
# Single-pass kernel (whole (L, C) slab of a batch tile resident in VMEM)
# ----------------------------------------------------------------------------
def _make_eca_kernel(k_size, l_chunks, use_band):
    pad = (k_size - 1) // 2

    def kernel(p_ref, x_ref, o_ref):
        # p_ref : SMEM (k,) f32 conv weights   (roll path)   OR
        #         VMEM (C, C) f32 band matrix  (band path)
        # x_ref : VMEM (TB, L, C) input tile
        # o_ref : VMEM (TB, L, C) output tile
        tb, L, C = x_ref.shape

        # --- streamed relu(mean over L), f32 accumulation (bounded temps) ----
        acc = jnp.zeros((tb, C), jnp.float32)
        for (s, n) in l_chunks:                     # fully unrolled, static offsets
            acc = acc + jnp.sum(
                x_ref[:, pl.ds(s, n), :].astype(jnp.float32), axis=1)
        y = jnp.maximum(acc * (1.0 / L), 0.0)       # (TB, C)

        # --- 1-D conv over channels with zero "SAME" padding ------------------
        if use_band:
            # Any C: tiny MXU matmul against the precomputed band matrix.
            conv = jnp.dot(y, p_ref[...], preferred_element_type=jnp.float32)
        else:
            # C % 128 == 0: XLU roll + boundary mask (no extra memory).
            lane = jax.lax.broadcasted_iota(jnp.int32, (tb, C), 1)
            conv = p_ref[pad] * y
            for t in range(k_size):
                off = t - pad                        # conv[i] += w[t] * y[i + off]
                if off == 0:
                    continue
                sh = pltpu.roll(y, shift=(-off) % C, axis=1)
                if off > 0:
                    sh = jnp.where(lane >= C - off, 0.0, sh)
                else:
                    sh = jnp.where(lane < -off, 0.0, sh)
                conv = conv + p_ref[t] * sh

        # Attention gate; cast ONCE to the output dtype so the scale pass runs
        # entirely in the input dtype (no full-tile f32 up/down casts).
        att = jax.nn.sigmoid(conv).astype(o_ref.dtype)      # (TB, C)

        # --- streamed scale: out = x * att ------------------------------------
        for (s, n) in l_chunks:
            o_ref[:, pl.ds(s, n), :] = x_ref[:, pl.ds(s, n), :] * att[:, None, :]

    return kernel


# ----------------------------------------------------------------------------
# Two-pass fallback: L-gridded mean accumulation + scale pass.
# Used when a single batch element's (L, C) slab exceeds the tile budget
# (e.g. very large L*C on v7x's 64 MiB VMEM).
# ----------------------------------------------------------------------------
def _eca_two_pass(x, conv_weight, tile_target, vmem_limit):
    b, l, c = x.shape
    k_size = int(conv_weight.shape[0])
    pad = (k_size - 1) // 2
    itemsize = jnp.dtype(x.dtype).itemsize

    tb = b if b <= 8 else 8                        # keep (tb, c) blocks legal
    tl = max(1, tile_target // max(1, tb * c * itemsize))
    if tl < l:
        tl = max(8, (tl // 8) * 8)
    tl = min(tl, l)

    grid = (pl.cdiv(b, tb), pl.cdiv(l, tl))
    inv_l = 1.0 / l
    need_l_mask = (l % tl) != 0

    # ---- pass 1: y = relu(mean over L), accumulated over the L grid axis ----
    def mean_kernel(x_ref, y_ref):
        j = pl.program_id(1)

        @pl.when(j == 0)
        def _init():
            y_ref[...] = jnp.zeros_like(y_ref)

        xs = x_ref[...].astype(jnp.float32)
        if need_l_mask:                            # zero rows past the true L
            row = jax.lax.broadcasted_iota(jnp.int32, x_ref.shape, 1) + j * tl
            xs = jnp.where(row < l, xs, 0.0)
        y_ref[...] += jnp.sum(xs, axis=1)

        @pl.when(j == pl.num_programs(1) - 1)
        def _finalize():
            y_ref[...] = jnp.maximum(y_ref[...] * inv_l, 0.0)

    y = pl.pallas_call(
        mean_kernel,
        out_shape=jax.ShapeDtypeStruct((b, c), jnp.float32),
        grid=grid,
        in_specs=[pl.BlockSpec((tb, tl, c), lambda i, j: (i, j, 0))],
        out_specs=pl.BlockSpec((tb, c), lambda i, j: (i, 0)),
        compiler_params=pltpu.CompilerParams(
            dimension_semantics=("parallel", "arbitrary"),
            vmem_limit_bytes=int(vmem_limit)),
    )(x)

    # Tiny (B, C) channel conv + sigmoid: plain XLA (negligible HBM traffic).
    w = conv_weight.astype(jnp.float32)
    yp = jnp.pad(y, ((0, 0), (pad, pad)))
    conv = sum(w[t] * yp[:, t:t + c] for t in range(k_size))
    att = jax.nn.sigmoid(conv).astype(x.dtype)     # (B, C)

    # ---- pass 2: out = x * att ----------------------------------------------
    def scale_kernel(x_ref, a_ref, o_ref):
        o_ref[...] = x_ref[...] * a_ref[...][:, None, :]

    return pl.pallas_call(
        scale_kernel,
        out_shape=jax.ShapeDtypeStruct((b, l, c), x.dtype),
        grid=grid,
        in_specs=[pl.BlockSpec((tb, tl, c), lambda i, j: (i, j, 0)),
                  pl.BlockSpec((tb, c), lambda i, j: (i, 0))],
        out_specs=pl.BlockSpec((tb, tl, c), lambda i, j: (i, j, 0)),
        compiler_params=pltpu.CompilerParams(
            dimension_semantics=("parallel", "parallel"),
            vmem_limit_bytes=int(vmem_limit)),
    )(x, att)


# ----------------------------------------------------------------------------
# Public wrapper
# ----------------------------------------------------------------------------
def eca_forward(x, conv_weight, *, max_tile_bytes=None, vmem_limit_bytes=None):
    """ECA forward.  x: (B, L, C); conv_weight: (k,) with k odd."""
    b, l, c = x.shape
    k_size = int(conv_weight.shape[0])
    itemsize = jnp.dtype(x.dtype).itemsize

    tile_target, vmem_limit, n_cores = _vmem_budget()
    if max_tile_bytes is not None:
        tile_target = int(max_tile_bytes)
    if vmem_limit_bytes is not None:
        vmem_limit = int(vmem_limit_bytes)

    per_batch = l * c * itemsize
    if per_batch > tile_target:
        # A single (L, C) slab does not fit the per-core tile budget.
        return _eca_two_pass(x, conv_weight, tile_target, vmem_limit)

    # Batch tile: as big as the budget allows, but keep >= 2 grid steps per
    # TensorCore (v7x: >= 4 steps total) when B allows, so input/output DMAs
    # stay double-buffered.
    tb = max(1, min(b, tile_target // per_batch))
    min_steps = 2 * n_cores
    tb = min(tb, pl.cdiv(b, min(min_steps, b)))
    grid = (pl.cdiv(b, tb),)

    l_chunks = _split_l(l, tb, c)
    use_band = (c % 128) != 0
    kernel = _make_eca_kernel(k_size, l_chunks, use_band)

    if use_band:
        params = _band_matrix(conv_weight, c, k_size)          # (C, C) f32
        p_spec = pl.BlockSpec((c, c), lambda i: (0, 0))
    else:
        params = conv_weight.astype(jnp.float32)               # (k,) f32 in SMEM
        p_spec = pl.BlockSpec(memory_space=pltpu.MemorySpace.SMEM)

    ce = pl.CostEstimate(
        flops=2 * b * l * c + 2 * k_size * b * c,
        transcendentals=b * c,
        bytes_accessed=2 * b * l * c * itemsize)

    return pl.pallas_call(
        kernel,
        out_shape=jax.ShapeDtypeStruct((b, l, c), x.dtype),
        grid=grid,
        in_specs=[p_spec, pl.BlockSpec((tb, l, c), lambda i: (i, 0, 0))],
        out_specs=pl.BlockSpec((tb, l, c), lambda i: (i, 0, 0)),
        compiler_params=pltpu.CompilerParams(
            dimension_semantics=("parallel",),
            vmem_limit_bytes=int(vmem_limit)),
        cost_estimate=ce,
    )(params, x)


def eca_reference(x, conv_weight):
    """Pure-JAX reference reproducing the PyTorch ECA_Layer.forward."""
    k = conv_weight.shape[0]
    pad = (k - 1) // 2
    c = x.shape[-1]
    y = jnp.maximum(jnp.mean(x, axis=1, keepdims=True), 0.0)   # (B, 1, C)
    yp = jnp.pad(y, ((0, 0), (0, 0), (pad, pad)))              # zero pad on C
    conv = sum(conv_weight[t] * yp[:, :, t:t + c] for t in range(k))
    att = jax.nn.sigmoid(conv)
    return x * att


if __name__ == "__main__":
    key = jax.random.PRNGKey(0)
    kx, kw, kx2, kx3 = jax.random.split(key, 4)

    k_size = 3
    # Deterministic synthetic init for Conv1d(1, 1, k_size, bias=False) weight.
    conv_weight = (jax.random.uniform(kw, (k_size,), dtype=jnp.float32) - 0.5) * 0.8

    # 1) Main single-pass path: C a multiple of 128 -> XLU roll conv.
    B, L, C = 2, 8, 128
    x = jax.random.normal(kx, (B, L, C), dtype=jnp.float32)
    out = jax.block_until_ready(eca_forward(x, conv_weight))
    ref = eca_reference(x, conv_weight)
    assert out.shape == (B, L, C)
    assert jnp.allclose(out, ref, atol=1e-5, rtol=1e-5), "mismatch (roll path)"

    # 2) Native non-128-multiple channel count -> banded-matmul conv,
    #    no host-side pad of x / slice of out.
    x2 = jax.random.normal(kx2, (2, 8, 96), dtype=jnp.float32)
    out2 = jax.block_until_ready(eca_forward(x2, conv_weight))
    assert jnp.allclose(out2, eca_reference(x2, conv_weight),
                        atol=1e-5, rtol=1e-5), "mismatch (band path)"

    # 3) Two-pass fallback (forced via a tiny tile budget) for (L, C) slabs that
    #    exceed per-core VMEM — exercises the L-gridded mean accumulation.
    x3 = jax.random.normal(kx3, (2, 16, 128), dtype=jnp.float32)
    out3 = jax.block_until_ready(eca_forward(x3, conv_weight, max_tile_bytes=4096))
    assert jnp.allclose(out3, eca_reference(x3, conv_weight),
                        atol=1e-5, rtol=1e-5), "mismatch (two-pass path)"

    print("KERNEL_OK")
</pallas_src>

<mosaic_0001>
module attributes {stable_mosaic.version = 11 : i64} {
  func.func @kernel(%arg0: i32, %arg1: memref<3xf32, #tpu.memory_space<smem>>, %arg2: memref<1x8x128xf32, #tpu.memory_space<vmem>>, %arg3: memref<1x8x128xf32, #tpu.memory_space<vmem>>) attributes {dimension_semantics = [#tpu.dimension_semantics<parallel>], iteration_bounds = array<i64: 2>, scalar_prefetch = 0 : i64, scratch_operands = 0 : i64, tpu.core_type = #tpu.core_type<tc>, window_params = [{transform_indices = @transform_0, window_bounds = array<i64: 3>}, {transform_indices = @transform_1, window_bounds = array<i64: 1, 8, 128>}, {transform_indices = @transform_2, window_bounds = array<i64: 1, 8, 128>}]} {
    %cst = arith.constant 0.000000e+00 : f32
    %0 = vector.broadcast %cst : f32 to vector<1x128xf32>
    %c0 = arith.constant 0 : index
    %c0_0 = arith.constant 0 : index
    %c0_1 = arith.constant 0 : index
    %1 = vector.load %arg2[%c0, %c0_0, %c0_1] : memref<1x8x128xf32, #tpu.memory_space<vmem>>, vector<1x8x128xf32>
    %cst_2 = arith.constant dense<0.000000e+00> : vector<1x128xf32>
    %2 = vector.multi_reduction <add>, %1, %cst_2 [1] : vector<1x8x128xf32> to vector<1x128xf32>
    %3 = arith.addf %0, %2 : vector<1x128xf32>
    %cst_3 = arith.constant 1.250000e-01 : f32
    %4 = vector.broadcast %cst_3 : f32 to vector<1x128xf32>
    %5 = arith.mulf %3, %4 : vector<1x128xf32>
    %cst_4 = arith.constant 0.000000e+00 : f32
    %6 = vector.broadcast %cst_4 : f32 to vector<1x128xf32>
    %7 = arith.maximumf %5, %6 : vector<1x128xf32>
    %8 = tpu.iota {dimensions = array<i32: 1>} : vector<1x128xi32>
    %c1 = arith.constant 1 : index
    %9 = memref.load %arg1[%c1] : memref<3xf32, #tpu.memory_space<smem>>
    %10 = vector.broadcast %9 : f32 to vector<1x128xf32>
    %11 = arith.mulf %10, %7 : vector<1x128xf32>
    %c1_i32 = arith.constant 1 : i32
    %12 = tpu.dynamic_rotate %7 by %c1_i32 dim 1 : vector<1x128xf32>, i32 -> vector<1x128xf32>
    %c1_i32_5 = arith.constant 1 : i32
    %13 = vector.broadcast %c1_i32_5 : i32 to vector<1x128xi32>
    %14 = arith.cmpi slt, %8, %13 : vector<1x128xi32>
    %cst_6 = arith.constant 0.000000e+00 : f32
    %15 = vector.broadcast %cst_6 : f32 to vector<1x128xf32>
    %16 = arith.select %14, %15, %12 : vector<1x128xi1>, vector<1x128xf32>
    %c0_7 = arith.constant 0 : index
    %17 = memref.load %arg1[%c0_7] : memref<3xf32, #tpu.memory_space<smem>>
    %18 = vector.broadcast %17 : f32 to vector<1x128xf32>
    %19 = arith.mulf %18, %16 : vector<1x128xf32>
    %20 = arith.addf %11, %19 : vector<1x128xf32>
    %c127_i32 = arith.constant 127 : i32
    %21 = tpu.dynamic_rotate %7 by %c127_i32 dim 1 : vector<1x128xf32>, i32 -> vector<1x128xf32>
    %c127_i32_8 = arith.constant 127 : i32
    %22 = vector.broadcast %c127_i32_8 : i32 to vector<1x128xi32>
    %23 = arith.cmpi sge, %8, %22 : vector<1x128xi32>
    %cst_9 = arith.constant 0.000000e+00 : f32
    %24 = vector.broadcast %cst_9 : f32 to vector<1x128xf32>
    %25 = arith.select %23, %24, %21 : vector<1x128xi1>, vector<1x128xf32>
    %c2 = arith.constant 2 : index
    %26 = memref.load %arg1[%c2] : memref<3xf32, #tpu.memory_space<smem>>
    %27 = vector.broadcast %26 : f32 to vector<1x128xf32>
    %28 = arith.mulf %27, %25 : vector<1x128xf32>
    %29 = arith.addf %20, %28 : vector<1x128xf32>
    %30 = arith.negf %29 : vector<1x128xf32>
    %31 = math.exp %30 : vector<1x128xf32>
    %cst_10 = arith.constant 1.000000e+00 : f32
    %32 = vector.broadcast %cst_10 : f32 to vector<1x128xf32>
    %33 = arith.addf %32, %31 : vector<1x128xf32>
    %34 = arith.divf %32, %33 : vector<1x128xf32>
    %c0_11 = arith.constant 0 : index
    %c0_12 = arith.constant 0 : index
    %c0_13 = arith.constant 0 : index
    %35 = vector.load %arg2[%c0_11, %c0_12, %c0_13] : memref<1x8x128xf32, #tpu.memory_space<vmem>>, vector<1x8x128xf32>
    %36 = vector.shape_cast %34 : vector<1x128xf32> to vector<1x1x128xf32>
    %37 = vector.broadcast %36 : vector<1x1x128xf32> to vector<1x8x128xf32>
    %38 = arith.mulf %35, %37 : vector<1x8x128xf32>
    %c0_14 = arith.constant 0 : index
    %c0_15 = arith.constant 0 : index
    %c0_16 = arith.constant 0 : index
    %39 = vector.load %arg3[%c0_14, %c0_15, %c0_16] : memref<1x8x128xf32, #tpu.memory_space<vmem>>, vector<1x8x128xf32>
    tpu.vector_store %arg3[%c0_14, %c0_15, %c0_16], %38 {strides = array<i32>} : memref<1x8x128xf32, #tpu.memory_space<vmem>>, vector<1x8x128xf32>,
    return
  }
  func.func @transform_0(%arg0: i32) -> i32 {
    %c0_i32 = arith.constant 0 : i32
    %c0_i32_0 = arith.constant 0 : i32
    return %c0_i32 : i32
  }
  func.func @transform_1(%arg0: i32) -> (i32, i32, i32) {
    %c0_i32 = arith.constant 0 : i32
    %c0_i32_0 = arith.constant 0 : i32
    %c0_i32_1 = arith.constant 0 : i32
    return %arg0, %c0_i32, %c0_i32_0 : i32, i32, i32
  }
  func.func @transform_2(%arg0: i32) -> (i32, i32, i32) {
    %c0_i32 = arith.constant 0 : i32
    %c0_i32_0 = arith.constant 0 : i32
    %c0_i32_1 = arith.constant 0 : i32
    return %arg0, %c0_i32, %c0_i32_0 : i32, i32, i32
  }
}

</mosaic_0001>

<bundles_post_ra>
// kernel: tpu_custom_call.1
= control target key start
LH: loop header
LB: loop body
LE: loop exit
PB: predicated region body
PF: predicated region fallthrough
CT: control target
= control target key end

     0   :  { %7 = vsyncpa [#allocation5], 0  ;;  %s683_s0 = inlined_call_operand.hbm [shape: f32[3], index: 0, kind: input, shape index: {}]   ;;  %s684_s1 = inlined_call_operand.hbm [shape: f32[2,8,128], index: 1, kind: input, shape index: {}]   ;;  %s685_s2 = inlined_call_operand.hbm [shape: f32[2,8,128], index: 2, kind: output, shape index: {}]  }
   0x1   :  { %8 = vsyncpa [#allocation3], 0 }
   0x2   :  { %10 = vsyncpa [#allocation3 + $0x1], 0 }
   0x3   :  { %11 = vsyncpa [#allocation4], 0 }
   0x4   :  { %13 = vsyncpa [#allocation4 + $0x1], 0  ;;  %s541_s9 = smov 0   ;;  %s543_s10 = smov 0  }
   0x5   :  { %s545_s11 = smov 0   ;;  %s547_s12 = smov 0  }
   0x6 LB: > { %s562_s13 = sadd.s32 4294967295, %s521_s12   ;;  %s326_s14 = sadd.s32 4294967294, %s521_s12   ;;  %s521_s12 = sphi %s547_s12, %s695_s12   ;;  %s517_s11 = sphi %s545_s11, %s694_s11   ;;  %s513_s10 = sphi %s543_s10, %s693_s10   ;;  %s509_s9 = sphi %s541_s9, %s692_s9  }
   0x7   : > { %p60_p0 = scmp.ne.s32.totalorder %s513_s10, %s509_s9  ;;  %p61_p1 = scmp.eq.s32.totalorder %s562_s13, 0 }
   0x8   : > { %p84_p2 = scmp.eq.s32.totalorder %s562_s13, 1  ;;  %p90_p3 = scmp.eq.s32.totalorder %s326_s14, 1 }
   0x9   : > { %p571_p4 = por %p61_p1, %p60_p0  ;;  %p327_p5 = scmp.ge.s32.totalorder %s521_s12, 1 }
   0xa   : > { %p576_p6 = por %p90_p3, %p60_p0  ;;  %p97_p7 = scmp.lt.s32.totalorder %s521_s12, 3 }
   0xb   : > { %s109_s19 = sshll.u32 %s683_s0, 4  ;;  %s592_s21 = sadd.s32 1, %s521_s12   ;;  %s110_s19 = int_to_ptr.hbm [resolvable:$true] %s109_s19 }
   0xc   : > { %p584_p8 = pnand %p327_p5, %p97_p7  ;;  %s44_s22 = ssub.s32 %s521_s12, %s592_s21 }
   0xd   : > { %p45_p12 = scmp.eq.s32.totalorder %s44_s22, 0  ;;  %s47_s23 = sadd.s32 1, %s517_s11 }
   0xe   : > { %p351_p10 = pneg %p584_p8  ;;  %p54_p13 = scmp.ne.s32.totalorder %s517_s11, %s513_s10 }
   0xf   : > { %s523_s24 = smov [#allocation2]   ;;  %p55_p0 = scmp.eq.s32.totalorder %s521_s12, 0 }
  0x10   : > { %p352_p11 = pnand %p351_p10, %p61_p1  ;;  %p607_p3 = por %p84_p2, %p54_p13 }
  0x11   : > { %s602_s25 = scalar_select %p45_p12, %s517_s11, %s47_s23  }
  0x12   : > { %354 = dma.hbm_to_smem (!%p352_p11), %s110_s19, 16, %s523_s24, [#allocation5]  }
  0x13   : > { %s120_s27 = sand.u32 1, %s517_s11   ;;  %p56_p5 = por %p55_p0, %p54_p13 }
  0x14   : > { %p364_p7 = scmp.lt.s32.totalorder %s521_s12, 2  ;;  %s330_s28 = sshll.u32 %s120_s27, 3 }
  0x15   : > { %s331_s29 = sshll.u32 %s521_s12, 3  ;;  %s124_s6 = scalar_lea.vmem [#allocation6], %s330_s28 }
  0x16   : > { %s128_s4 = scalar_lea.hbm %s684_s1, %s331_s29  ;;  %s132_s7 = sshll.u32 %s124_s6, 4  ;;  %s133_s7 = int_to_ptr.vmem [resolvable:$true] %s132_s7 }
  0x17   : > { %s130_s5 = sshll.u32 %s128_s4, 4  ;;  %p617_p10 = pnand %p364_p7, %p56_p5  ;;  %s131_s5 = int_to_ptr.hbm [resolvable:$true] %s130_s5 }
  0x18   : > { %s121_s14 = scalar_lea.sflag [#allocation3], %s120_s27  ;;  %s421_s17 = sshra.s32 %s131_s5, 4  ;;  %s422_s17 = int_to_ptr.hbm [resolvable:$true] %s421_s17 }
  0x19   : > { %s423_s18 = scalar_lea.hbm %s422_s17, 8  ;;  %p425_p11 = pneg %p617_p10 }
  0x1a   : > { %p424_p2 = scmp.ne.s32.totalorder %s422_s17, %s423_s18  ;;  %s428_s23 = scalar_lea.hbm %s684_s1, 16 }
  0x1b   : > { %p429_p0 = scmp.lt.s32.totalorder %s422_s17, %s684_s1  ;;  %p430_p5 = scmp.lt.s32.totalorder %s428_s23, %s423_s18 }
  0x1c   : > { %p426_p12 = pnand %p425_p11, %p424_p2 }
  0x1d   : > { %p431_p7 = por %p430_p5, %p429_p0 }
  0x1e   : > { %p427_p13 = pneg %p426_p12 }
  0x20   : > { %p432_p9 = pnand %p431_p7, %p427_p13 }
  0x22   : > { %435 = shalt.err (!%p432_p9)
}
  0x23   : > { %358 = dma.hbm_to_vmem [thread:$0]  (!%p617_p10), %s131_s5, 128, %s133_s7, %s121_s14  }
  0x24   : > { %141 = sbr.rel (%p584_p8) target bundleno = 228 (0xe4), region = 28 }
  0x29   : > { %496 = dma.done.wait (%p61_p1), [#allocation5], 16  }
  0x2a   : > { %498 = vsyncadd (%p61_p1), [#allocation5], 4294967280  ;;  %s638_s27 = sand.u32 1, %s513_s10  }
  0x2b   : > { %s334_s29 = sshll.u32 %s638_s27, 3  ;;  %s149_s30 = scalar_lea.sflag [#allocation3], %s638_s27 }
  0x2c   : > { %s152_s3 = scalar_lea.vmem [#allocation6], %s334_s29 }
  0x2d   : > { %500 = dma.done.wait (%p571_p4), %s149_s30, 128  }
  0x2e   : > { %502 = vsyncadd (%p571_p4), %s149_s30, 4294967168 }
  0x2f   : > { %158 = sfence }
  0x30   : > { %v175_v0 = vld [vmem:[%s152_s3] sm:$0xff]  ;;  %s524_s20 = smov 1   ;;  %s525_s4 = smov 127   ;;  %v185_v9 = vlaneseq }
  0x31   : > { %v176_v1 = vrot.slane %v175_v0, 4  ;;  %s336_s5 = sld [smem:[#allocation2 + $0x1]]  ;;  %s340_s7 = sshll.u32 %s562_s13, 3 }
  0x32   : > { %s194_s6 = sld [smem:[#allocation2]]  ;;  %v186_v10 = vand.u32 127, %v185_v9  ;;  %s239_s17 = scalar_lea.hbm %s685_s2, %s340_s7 }
  0x33   : > { %v177_v2 = vadd.f32 %v176_v1, %v175_v0  ;;  %s337_s15 = sld [smem:[#allocation2 + $0x2]]  ;;  %s174_s18 = scalar_lea.vmem [#allocation7], %s334_s29 }
  0x34   : > { %vm192_vm0 = vcmp.lt.s32.totalorder %v186_v10, 1  ;;  %vm200_vm1 = vcmp.ge.s32.totalorder %v186_v10, 127  ;;  %s241_s19 = sshll.u32 %s174_s18, 4  ;;  %s243_s13 = sshll.u32 %s239_s17, 4  ;;  %s242_s19 = int_to_ptr.vmem [resolvable:$true] %s241_s19  ;;  %s244_s13 = int_to_ptr.hbm [resolvable:$true] %s243_s13 }
  0x35   : > { %v178_v3 = vrot.slane %v177_v2, 2  ;;  %s229_s22 = scalar_lea.sflag [#allocation4], %s638_s27  ;;  %s465_s23 = sshra.s32 %s244_s13, 4  ;;  %s466_s23 = int_to_ptr.hbm [resolvable:$true] %s465_s23 }
  0x36   : > { %s467_s24 = scalar_lea.hbm %s466_s23, 8  ;;  %s471_s3 = scalar_lea.hbm %s685_s2, 16 }
  0x37   : > { %v179_v4 = vadd.f32 %v178_v3, %v177_v2  ;;  %v188_v12 = vstv %s336_s5  ;;  %p468_p1 = scmp.ne.s32.totalorder %s466_s23, %s467_s24  ;;  %p472_p9 = scmp.lt.s32.totalorder %s466_s23, %s685_s2 }
  0x38   : > { %v195_v13 = vstv %s194_s6  ;;  %p473_p10 = scmp.lt.s32.totalorder %s471_s3, %s467_s24 }
  0x39   : > { %v180_v5 = vrot.slane %v179_v4, 1  ;;  %v203_v17 = vstv %s337_s15  ;;  %p469_p4 = pnand %p468_p1, %p607_p3 }
  0x3a   : > { %p474_p2 = por %p473_p10, %p472_p9 }
  0x3b   : > { %v181_v6 = vadd.f32 %v180_v5, %v179_v4  ;;  %p470_p8 = pneg %p469_p4 }
  0x3d   : > { %v183_v7 = vmul.f32 0.125, %v181_v6  ;;  %p475_p11 = pnand %p474_p2, %p470_p8 }
  0x3f   : > { %v184_v8 = vmax.f32 %v183_v7, 0.0 }
  0x41   : > { %190 = vrot.lane.b32.xlu0 %v184_v8, %s524_s20  ;;  %v189_v15 = vmul.f32 %v188_v12, %v184_v8 }
  0x49   : > { %198 = vrot.lane.b32.xlu0 %v184_v8, %s525_s4 }
  0xb3   : > { %v191_v11 = vpop.permute.xlu0 %190 }
  0xb4   : > { %v193_v14 = vsel %vm192_vm0, 0.0, %v191_v11 }
  0xb5   : > { %v196_v16 = vmul.f32 %v195_v13, %v193_v14 }
  0xb7   : > { %v197_v20 = vadd.f32 %v196_v16, %v189_v15 }
  0xbb   : > { %v199_v18 = vpop.permute.xlu0 %198 }
  0xbc   : > { %v201_v19 = vsel %vm200_vm1, 0.0, %v199_v18 }
  0xbd   : > { %v204_v21 = vmul.f32 %v203_v17, %v201_v19 }
  0xbf   : > { %v205_v22 = vadd.f32 %v204_v21, %v197_v20 }
  0xc1   : > { %v338_v23 = vmul.f32 -1.442695, %v205_v22 }
  0xc3   : > { %402 = vpow2.f32 %v338_v23 }
  0xc9   : > { %v403_v24 = vpop.eup %402 }
  0xca   : > { %v209_v25 = vadd.f32 1.0, %v403_v24 }
  0xcc   : > { %404 = vrcp.f32 %v209_v25  ;;  %v221_v29 = vand.u32 2147483648, %v209_v25  ;;  %v219_v31 = vand.u32 2147483647, %v209_v25  ;;  %vm215_vm3 = vweird.f32 %v209_v25 }
  0xce   : > { %v222_v33 = vor.u32 1.1754944e-38, %v221_v29  ;;  %vm220_vm5 = vcmp.eq.f32.partialorder %v219_v31, 8.507059e+37 }
  0xd2   : > { %v405_v26 = vpop.eup %404 }
  0xd3   : > { %v211_v27 = vmul.f32 %v405_v26, %v209_v25  ;;  %vm216_vm2 = vweird.f32 %v405_v26 }
  0xd4   : > { %vm217_vm4 = vmor %vm215_vm3, %vm216_vm2 }
  0xd5   : > { %v212_v28 = vsub.f32 1.0, %v211_v27 }
  0xd7   : > { %v213_v30 = vmul.f32 %v405_v26, %v212_v28 }
  0xd9   : > { %v214_v32 = vadd.f32 %v405_v26, %v213_v30 }
  0xdb   : > { %v218_v34 = vsel %vm217_vm4, %v405_v26, %v214_v32 }
  0xdc   : > { %v223_v35 = vsel %vm220_vm5, %v222_v33, %v218_v34 }
  0xdd   : > { %v225_v36 = vperm.slane %v223_v35, 0 }
  0xdf   : > { %v226_v37 = vmul.f32 %v225_v36, %v175_v0 }
  0xe1   : > { %227 = vst [vmem:[%s174_s18] sm:$0xff] %v226_v37 }
  0xe2   : > { %478 = shalt.err (!%p475_p11)
}
  0xe3   : > { %349 = dma.vmem_to_hbm [thread:$0]  (%p607_p3), %s242_s19, 128, %s244_s13, %s229_s22  }
  0xe4 PF: > { %s255_s27 = sand.u32 1, %s509_s9   ;;  %p691_p12 = scmp.ge.s32.totalorder %s521_s12, 2 }
  0xe5   : > { %s256_s4 = scalar_lea.sflag [#allocation4], %s255_s27 }
  0xe6   : > { %p360_p13 = pnand %p691_p12, %p576_p6 }
  0xe8   : > { %p361_p0 = pneg %p360_p13 }
  0xea   : > { %504 = dma.done.wait (%p361_p0), %s256_s4, 128  }
  0xeb   : > { %506 = vsyncadd (%p361_p0), %s256_s4, 4294967168  ;;  %p16_p5 = scmp.ge.s32.totalorder %s592_s21, 4   ;;  %s692_s9 = smov %s513_s10 }
  0xec   : > { %s693_s10 = smov %s517_s11  ;;  %s694_s11 = smov %s602_s25 }
  0xed   : > { %s695_s12 = smov %s592_s21  ;;  %18 = sbr.rel (!%p16_p5) target bundleno = 6 (0x6), region = 78 }
  0xf2   :  { %262 = vsyncpa [#allocation3], 1 }
  0xf3   :  { %264 = vsyncpa [#allocation3 + $0x1], 1 }
  0xf4   :  { %265 = vsyncpa [#allocation4], 1 }
  0xf5   :  { %267 = vsyncpa [#allocation4 + $0x1], 1 }
  0xf6   :  { %268 = vsyncpa [#allocation5], 1 }
  0xf7   :  { %270 = vsyncpa [#allocation5 + $0x1], 1 }

</bundles_post_ra>
